<compile_context>
chip_gen: v6e
topology: v6e:2x2x1
jax: 0.10.0
libtpu: 0.0.40
codegen_flags: <defaults>
</compile_context>

<pallas_src>
import functools

import jax
import jax.numpy as jnp
from jax.experimental import pallas as pl
from jax.experimental.pallas import tpu as pltpu


_LANE = 128


def _round_up(a, m):
    return ((a + m - 1) // m) * m


def _physical_vmem_bytes():
    try:
        info = pltpu.get_tpu_info()
        cap = getattr(info, "vmem_capacity_bytes", None)
        if cap:
            return int(cap)
    except Exception:
        pass
    return 64 << 20  # conservative default (v7x per-TensorCore VMEM)


def _vmem_limit(live_bytes, phys_bytes):
    lim = int(live_bytes) + (4 << 20)
    cap = int(phys_bytes) * 9 // 10
    return int(max(16 << 20, min(cap, lim)))


# --------------------------------------------------------------------------
# Single-pass kernel: pooling + fused shared MLP + gate + multiply, per batch
# block.  x_ref/o_ref: (bt, C, S);  w1t: (C, Ch); b1: (1, Ch); w2t: (Ch, C);
# b2: (1, C).
# --------------------------------------------------------------------------
def _single_pass_kernel(x_ref, w1t_ref, b1_ref, w2t_ref, b2_ref, o_ref, *, s_true):
    bt = x_ref.shape[0]
    inv_s = 1.0 / float(s_true)

    # Whole-block pooling: the block's last dim equals the true S, so every
    # lane is valid -> no iota/mask needed, no per-batch python unroll.
    mx = jnp.max(x_ref[...], axis=-1).astype(jnp.float32)           # (bt, C)
    av = jnp.sum(x_ref[...], axis=-1, dtype=jnp.float32) * inv_s    # (bt, C)
    p = jnp.concatenate([mx, av], axis=0)                           # (2bt, C)

    # Fused shared MLP: one matmul per layer for all (max|avg, batch) rows;
    # rows are independent so a ragged (OOB) tail batch row cannot contaminate
    # valid rows.
    h = jnp.dot(p, w1t_ref[...], preferred_element_type=jnp.float32) + b1_ref[...]
    h = jnp.maximum(h, 0.0)                                          # (2bt, Ch)
    z = jnp.dot(h, w2t_ref[...], preferred_element_type=jnp.float32) + b2_ref[...]
    gate = jax.nn.sigmoid(z[:bt] + z[bt:2 * bt])                     # (bt, C) f32

    # Cast the gate (not the big tile) and stream the multiply from the VMEM
    # tile; no large live value across the MLP.
    g = gate.astype(o_ref.dtype)[:, :, None]                         # (bt, C, 1)
    o_ref[...] = (x_ref[...] * g).astype(o_ref.dtype)


# --------------------------------------------------------------------------
# Two-pass fallback (single-pass tile exceeds the VMEM budget).
# --------------------------------------------------------------------------
def _pool_kernel(x_ref, pmax_ref, psum_ref, *, st, s_true, n_outer, ns_inner,
                 need_mask):
    # x_ref: (1, C, St); pmax/psum: (1, C, 1) f32 accumulators resident over si.
    bo = pl.program_id(0)
    si = pl.program_id(1)
    c = x_ref.shape[1]
    xf = x_ref[0].astype(jnp.float32)                                # (C, St)

    if need_mask:
        sb = (bo % n_outer) * ns_inner + si          # intended spatial block
        lane = jax.lax.broadcasted_iota(jnp.int32, (c, st), 1) + sb * st
        valid = lane < s_true
        x_for_max = jnp.where(valid, xf, -jnp.inf)
        x_for_sum = jnp.where(valid, xf, 0.0)        # mask sum as well (no pad)
    else:
        x_for_max = xf
        x_for_sum = xf

    blk_max = jnp.max(x_for_max, axis=-1, keepdims=True)             # (C, 1)
    blk_sum = jnp.sum(x_for_sum, axis=-1, keepdims=True)             # (C, 1)

    @pl.when(si == 0)
    def _():
        pmax_ref[0] = blk_max
        psum_ref[0] = blk_sum

    @pl.when(si > 0)
    def _():
        pmax_ref[0] = jnp.maximum(pmax_ref[0], blk_max)
        psum_ref[0] = psum_ref[0] + blk_sum


def _apply_gate_kernel(x_ref, g_ref, o_ref):
    # x_ref: (1, C, St); g_ref: (1, C, 1).  OOB tail of the boundary block is
    # discarded on store, so no masking needed here.
    g = g_ref[0].astype(o_ref.dtype)
    o_ref[0] = (x_ref[0] * g).astype(o_ref.dtype)


# --------------------------------------------------------------------------
# Wrapper
# --------------------------------------------------------------------------
def channel_attention(x, w1, b1, w2, b2, *, vmem_live_budget_bytes=None):
    """x: (B, C, H, W); w1: (C//r, C); b1: (C//r,); w2: (C, C//r); b2: (C,)."""
    B, C, H, W = x.shape
    Ch = w1.shape[0]
    S = H * W
    itemsize = jnp.dtype(x.dtype).itemsize
    x_flat = x.reshape(B, C, S)

    phys = _physical_vmem_bytes()
    budget = (vmem_live_budget_bytes if vmem_live_budget_bytes is not None
              else phys * 6 // 10)   # ~76 MiB on v5e/v6e, ~38 MiB on v7x

    # VMEM footprint of one batch row, accounting for (8,128) layout padding.
    per_batch_bytes = _round_up(C, 8) * _round_up(S, _LANE) * itemsize
    single_pass_ok = 4 * per_batch_bytes <= budget   # in+out, double-buffered

    # ---------------- single-pass path: x read from HBM exactly once --------
    if single_pass_ok:
        target_tile = 8 << 20                         # ~8 MiB per block
        bt_vmem = max(1, budget // (4 * per_batch_bytes))
        bt_target = max(1, target_tile // per_batch_bytes)
        bt = int(min(B, bt_vmem, bt_target))
        if B >= 2:
            bt = min(bt, (B + 1) // 2)    # keep >= 2 parallel steps (megacore)
        grid_b = pl.cdiv(B, bt)           # B need not divide evenly

        live = 4 * bt * per_batch_bytes
        kernel = functools.partial(_single_pass_kernel, s_true=S)

        out = pl.pallas_call(
            kernel,
            out_shape=jax.ShapeDtypeStruct((B, C, S), x.dtype),
            grid_spec=pltpu.PrefetchScalarGridSpec(
                num_scalar_prefetch=0,
                grid=(grid_b,),
                in_specs=[
                    pl.BlockSpec((bt, C, S), lambda i: (i, 0, 0)),   # x tile
                    pl.BlockSpec((C, Ch), lambda i: (0, 0)),          # w1.T
                    pl.BlockSpec((1, Ch), lambda i: (0, 0)),          # b1
                    pl.BlockSpec((Ch, C), lambda i: (0, 0)),          # w2.T
                    pl.BlockSpec((1, C), lambda i: (0, 0)),           # b2
                ],
                out_specs=pl.BlockSpec((bt, C, S), lambda i: (i, 0, 0)),
            ),
            compiler_params=pltpu.CompilerParams(
                dimension_semantics=("parallel",),
                vmem_limit_bytes=_vmem_limit(live, phys)),
        )(x_flat, w1.T, b1.reshape(1, Ch), w2.T, b2.reshape(1, C))
        return out.reshape(B, C, H, W)

    # -------- two-pass fallback (single-pass tile exceeds the VMEM budget) --
    # Pass 1: only the input is double-buffered (outputs are tiny), so size St
    # against 2x, not 4x.
    st_elems = max(1, budget // (2 * _round_up(C, 8) * itemsize))
    St = max(_LANE, (st_elems // _LANE) * _LANE)
    if St >= S:
        St = S                                  # full dim -> no ragged block
    nS = pl.cdiv(S, St)
    # With a single batch, split the spatial reduction over a parallel outer
    # axis so both TensorCores work; partials are combined in the JAX MLP step.
    n_outer = 2 if (B == 1 and nS >= 2) else 1
    ns_inner = pl.cdiv(nS, n_outer)
    need_mask = (S % St != 0) or (n_outer * ns_inner != nS)

    def x_map_p1(bo, si):
        b = bo // n_outer
        sb = (bo % n_outer) * ns_inner + si
        return (b, 0, jnp.minimum(sb, nS - 1))   # clamp; OOB blocks fully masked

    pool_kernel = functools.partial(
        _pool_kernel, st=St, s_true=S, n_outer=n_outer, ns_inner=ns_inner,
        need_mask=need_mask)

    pmax, psum = pl.pallas_call(
        pool_kernel,
        out_shape=(jax.ShapeDtypeStruct((B * n_outer, C, 1), jnp.float32),
                   jax.ShapeDtypeStruct((B * n_outer, C, 1), jnp.float32)),
        grid_spec=pltpu.PrefetchScalarGridSpec(
            num_scalar_prefetch=0,
            grid=(B * n_outer, ns_inner),
            in_specs=[pl.BlockSpec((1, C, St), x_map_p1)],
            out_specs=(pl.BlockSpec((1, C, 1), lambda bo, si: (bo, 0, 0)),
                       pl.BlockSpec((1, C, 1), lambda bo, si: (bo, 0, 0))),
        ),
        compiler_params=pltpu.CompilerParams(
            dimension_semantics=("parallel", "arbitrary"),
            vmem_limit_bytes=_vmem_limit(
                2 * _round_up(C, 8) * _round_up(St, _LANE) * itemsize, phys)),
    )(x_flat)

    # Combine per-outer partials and run the tiny shared MLP in plain JAX.
    mx = jnp.max(pmax.reshape(B, n_outer, C), axis=1)                 # (B, C)
    av = jnp.sum(psum.reshape(B, n_outer, C), axis=1) / float(S)      # (B, C)
    p2 = jnp.concatenate([mx, av], axis=0)                            # (2B, C)
    h = jnp.maximum(p2 @ w1.T + b1[None, :], 0.0)                     # (2B, Ch)
    z = h @ w2.T + b2[None, :]                                        # (2B, C)
    gate3 = jax.nn.sigmoid(z[:B] + z[B:])[:, :, None].astype(jnp.float32)

    # Pass 2: broadcast multiply, both grid axes parallel.
    st2_elems = max(1, budget // (4 * _round_up(C, 8) * itemsize))
    St2 = max(_LANE, (st2_elems // _LANE) * _LANE)
    if St2 >= S:
        St2 = S
    nS2 = pl.cdiv(S, St2)

    out = pl.pallas_call(
        _apply_gate_kernel,
        out_shape=jax.ShapeDtypeStruct((B, C, S), x.dtype),
        grid_spec=pltpu.PrefetchScalarGridSpec(
            num_scalar_prefetch=0,
            grid=(B, nS2),
            in_specs=[pl.BlockSpec((1, C, St2), lambda b, s: (b, 0, s)),
                      pl.BlockSpec((1, C, 1), lambda b, s: (b, 0, 0))],
            out_specs=pl.BlockSpec((1, C, St2), lambda b, s: (b, 0, s)),
        ),
        compiler_params=pltpu.CompilerParams(
            dimension_semantics=("parallel", "parallel"),
            vmem_limit_bytes=_vmem_limit(
                4 * _round_up(C, 8) * _round_up(St2, _LANE) * itemsize, phys)),
    )(x_flat, gate3)
    return out.reshape(B, C, H, W)


# --------------------------------------------------------------------------
# Pure-JAX reference of the PyTorch forward
# --------------------------------------------------------------------------
def _reference(x, w1, b1, w2, b2):
    mx = jnp.max(x, axis=(2, 3))                   # (B, C)
    av = jnp.mean(x, axis=(2, 3))                  # (B, C)

    def mlp(p):
        h = jnp.maximum(p @ w1.T + b1, 0.0)
        return h @ w2.T + b2

    gate = jax.nn.sigmoid(mlp(mx) + mlp(av))       # (B, C)
    return x * gate[:, :, None, None]


if __name__ == "__main__":
    C, ratio = 16, 8
    Ch = C // ratio

    key = jax.random.PRNGKey(0)
    kx, k1, k2, k3, k4, kx2, kx3, kx4 = jax.random.split(key, 8)
    w1 = jax.random.normal(k1, (Ch, C), dtype=jnp.float32) * 0.1
    b1 = jax.random.normal(k2, (Ch,), dtype=jnp.float32) * 0.1
    w2 = jax.random.normal(k3, (C, Ch), dtype=jnp.float32) * 0.1
    b2 = jax.random.normal(k4, (C,), dtype=jnp.float32) * 0.1

    # 1) lane-aligned spatial (S = 256): single-pass path
    x = jax.random.normal(kx, (2, C, 16, 16), dtype=jnp.float32)
    out = channel_attention(x, w1, b1, w2, b2)
    jax.block_until_ready(out)
    ref = _reference(x, w1, b1, w2, b2)
    assert out.shape == x.shape
    assert jnp.allclose(out, ref, atol=1e-5, rtol=1e-5), "single-pass mismatch"

    # 2) non-128-multiple spatial (S = 100): single-pass, no pad / no slice
    x2 = jax.random.normal(kx2, (2, C, 10, 10), dtype=jnp.float32)
    out2 = channel_attention(x2, w1, b1, w2, b2)
    jax.block_until_ready(out2)
    ref2 = _reference(x2, w1, b1, w2, b2)
    assert jnp.allclose(out2, ref2, atol=1e-5, rtol=1e-5), "unaligned-S mismatch"

    # 3) ragged batch (B=3, bt=2): single-pass boundary batch block
    x3 = jax.random.normal(kx3, (3, C, 12, 12), dtype=jnp.float32)
    out3 = channel_attention(x3, w1, b1, w2, b2)
    jax.block_until_ready(out3)
    ref3 = _reference(x3, w1, b1, w2, b2)
    assert jnp.allclose(out3, ref3, atol=1e-5, rtol=1e-5), "ragged-batch mismatch"

    # 4) tiny forced VMEM budget: two-pass fallback, aligned S, B=2
    out4 = channel_attention(x, w1, b1, w2, b2, vmem_live_budget_bytes=48 * 1024)
    jax.block_until_ready(out4)
    assert jnp.allclose(out4, ref, atol=1e-5, rtol=1e-5), "two-pass mismatch"

    # 5) tiny budget, B=1, non-aligned S=400: two-pass with spatial split + mask
    x5 = jax.random.normal(kx4, (1, C, 20, 20), dtype=jnp.float32)
    out5 = channel_attention(x5, w1, b1, w2, b2, vmem_live_budget_bytes=48 * 1024)
    jax.block_until_ready(out5)
    ref5 = _reference(x5, w1, b1, w2, b2)
    assert jnp.allclose(out5, ref5, atol=1e-5, rtol=1e-5), "split-two-pass mismatch"

    print("KERNEL_OK")
</pallas_src>

<mosaic_0001>
module attributes {stable_mosaic.version = 11 : i64} {
  func.func @_single_pass_kernel(%arg0: i32, %arg1: memref<1x16x256xf32, #tpu.memory_space<vmem>>, %arg2: memref<16x2xf32, #tpu.memory_space<vmem>>, %arg3: memref<1x2xf32, #tpu.memory_space<vmem>>, %arg4: memref<2x16xf32, #tpu.memory_space<vmem>>, %arg5: memref<1x16xf32, #tpu.memory_space<vmem>>, %arg6: memref<1x16x256xf32, #tpu.memory_space<vmem>>) attributes {dimension_semantics = [#tpu.dimension_semantics<parallel>], iteration_bounds = array<i64: 2>, scalar_prefetch = 0 : i64, scratch_operands = 0 : i64, tpu.core_type = #tpu.core_type<tc>, window_params = [{transform_indices = @transform_0, window_bounds = array<i64: 1, 16, 256>}, {pipeline_mode = #tpu.pipeline_mode<synchronous>, transform_indices = @transform_1, window_bounds = array<i64: 16, 2>}, {pipeline_mode = #tpu.pipeline_mode<synchronous>, transform_indices = @transform_2, window_bounds = array<i64: 1, 2>}, {pipeline_mode = #tpu.pipeline_mode<synchronous>, transform_indices = @transform_3, window_bounds = array<i64: 2, 16>}, {pipeline_mode = #tpu.pipeline_mode<synchronous>, transform_indices = @transform_4, window_bounds = array<i64: 1, 16>}, {transform_indices = @transform_5, window_bounds = array<i64: 1, 16, 256>}]} {
    %c0 = arith.constant 0 : index
    %c0_0 = arith.constant 0 : index
    %c0_1 = arith.constant 0 : index
    %0 = vector.load %arg1[%c0, %c0_0, %c0_1] : memref<1x16x256xf32, #tpu.memory_space<vmem>>, vector<1x16x256xf32>
    %cst = arith.constant dense<0xFF800000> : vector<1x16xf32>
    %1 = vector.multi_reduction <maximumf>, %0, %cst [2] : vector<1x16x256xf32> to vector<1x16xf32>
    %c0_2 = arith.constant 0 : index
    %c0_3 = arith.constant 0 : index
    %c0_4 = arith.constant 0 : index
    %2 = vector.load %arg1[%c0_2, %c0_3, %c0_4] : memref<1x16x256xf32, #tpu.memory_space<vmem>>, vector<1x16x256xf32>
    %cst_5 = arith.constant dense<0.000000e+00> : vector<1x16xf32>
    %3 = vector.multi_reduction <add>, %2, %cst_5 [2] : vector<1x16x256xf32> to vector<1x16xf32>
    %cst_6 = arith.constant 3.906250e-03 : f32
    %4 = vector.broadcast %cst_6 : f32 to vector<1x16xf32>
    %5 = arith.mulf %3, %4 : vector<1x16xf32>
    %6 = tpu.concatenate %1, %5 in 0 : vector<1x16xf32>, vector<1x16xf32> -> vector<2x16xf32>
    %c0_7 = arith.constant 0 : index
    %c0_8 = arith.constant 0 : index
    %7 = vector.load %arg2[%c0_7, %c0_8] : memref<16x2xf32, #tpu.memory_space<vmem>>, vector<16x2xf32>
    %cst_9 = arith.constant dense<0.000000e+00> : vector<2x2xf32>
    %8 = tpu.matmul %6, %7, %cst_9 {dimension_numbers = #tpu.dot_dimension_numbers<[1], [0], [0], [1], [0, 0, 1, 1], [], []>} : vector<2x16xf32>, vector<16x2xf32>, vector<2x2xf32> -> vector<2x2xf32>
    %c0_10 = arith.constant 0 : index
    %c0_11 = arith.constant 0 : index
    %9 = vector.load %arg3[%c0_10, %c0_11] : memref<1x2xf32, #tpu.memory_space<vmem>>, vector<1x2xf32>
    %10 = vector.broadcast %9 : vector<1x2xf32> to vector<2x2xf32>
    %11 = arith.addf %8, %10 : vector<2x2xf32>
    %cst_12 = arith.constant 0.000000e+00 : f32
    %12 = vector.broadcast %cst_12 : f32 to vector<2x2xf32>
    %13 = arith.maximumf %11, %12 : vector<2x2xf32>
    %c0_13 = arith.constant 0 : index
    %c0_14 = arith.constant 0 : index
    %14 = vector.load %arg4[%c0_13, %c0_14] : memref<2x16xf32, #tpu.memory_space<vmem>>, vector<2x16xf32>
    %cst_15 = arith.constant dense<0.000000e+00> : vector<2x16xf32>
    %15 = tpu.matmul %13, %14, %cst_15 {dimension_numbers = #tpu.dot_dimension_numbers<[1], [0], [0], [1], [0, 0, 1, 1], [], []>} : vector<2x2xf32>, vector<2x16xf32>, vector<2x16xf32> -> vector<2x16xf32>
    %c0_16 = arith.constant 0 : index
    %c0_17 = arith.constant 0 : index
    %16 = vector.load %arg5[%c0_16, %c0_17] : memref<1x16xf32, #tpu.memory_space<vmem>>, vector<1x16xf32>
    %17 = vector.broadcast %16 : vector<1x16xf32> to vector<2x16xf32>
    %18 = arith.addf %15, %17 : vector<2x16xf32>
    %19 = vector.extract_strided_slice %18 {offsets = [0, 0], sizes = [1, 16], strides = [1, 1]} : vector<2x16xf32> to vector<1x16xf32>
    %20 = vector.extract_strided_slice %18 {offsets = [1, 0], sizes = [1, 16], strides = [1, 1]} : vector<2x16xf32> to vector<1x16xf32>
    %21 = arith.addf %19, %20 : vector<1x16xf32>
    %22 = arith.negf %21 : vector<1x16xf32>
    %23 = math.exp %22 : vector<1x16xf32>
    %cst_18 = arith.constant 1.000000e+00 : f32
    %24 = vector.broadcast %cst_18 : f32 to vector<1x16xf32>
    %25 = arith.addf %24, %23 : vector<1x16xf32>
    %26 = arith.divf %24, %25 : vector<1x16xf32>
    %27 = vector.shape_cast %26 : vector<1x16xf32> to vector<1x16x1xf32>
    %c0_19 = arith.constant 0 : index
    %c0_20 = arith.constant 0 : index
    %c0_21 = arith.constant 0 : index
    %28 = vector.load %arg1[%c0_19, %c0_20, %c0_21] : memref<1x16x256xf32, #tpu.memory_space<vmem>>, vector<1x16x256xf32>
    %29 = vector.broadcast %27 : vector<1x16x1xf32> to vector<1x16x256xf32>
    %30 = arith.mulf %28, %29 : vector<1x16x256xf32>
    %c0_22 = arith.constant 0 : index
    %c0_23 = arith.constant 0 : index
    %c0_24 = arith.constant 0 : index
    %31 = vector.load %arg6[%c0_22, %c0_23, %c0_24] : memref<1x16x256xf32, #tpu.memory_space<vmem>>, vector<1x16x256xf32>
    tpu.vector_store %arg6[%c0_22, %c0_23, %c0_24], %30 {strides = array<i32>} : memref<1x16x256xf32, #tpu.memory_space<vmem>>, vector<1x16x256xf32>,
    return
  }
  func.func @transform_0(%arg0: i32) -> (i32, i32, i32) {
    %c0_i32 = arith.constant 0 : i32
    %c0_i32_0 = arith.constant 0 : i32
    %c0_i32_1 = arith.constant 0 : i32
    return %arg0, %c0_i32, %c0_i32_0 : i32, i32, i32
  }
  func.func @transform_1(%arg0: i32) -> (i32, i32) {
    %c0_i32 = arith.constant 0 : i32
    %c0_i32_0 = arith.constant 0 : i32
    %c0_i32_1 = arith.constant 0 : i32
    return %c0_i32, %c0_i32_0 : i32, i32
  }
  func.func @transform_2(%arg0: i32) -> (i32, i32) {
    %c0_i32 = arith.constant 0 : i32
    %c0_i32_0 = arith.constant 0 : i32
    %c0_i32_1 = arith.constant 0 : i32
    return %c0_i32, %c0_i32_0 : i32, i32
  }
  func.func @transform_3(%arg0: i32) -> (i32, i32) {
    %c0_i32 = arith.constant 0 : i32
    %c0_i32_0 = arith.constant 0 : i32
    %c0_i32_1 = arith.constant 0 : i32
    return %c0_i32, %c0_i32_0 : i32, i32
  }
  func.func @transform_4(%arg0: i32) -> (i32, i32) {
    %c0_i32 = arith.constant 0 : i32
    %c0_i32_0 = arith.constant 0 : i32
    %c0_i32_1 = arith.constant 0 : i32
    return %c0_i32, %c0_i32_0 : i32, i32
  }
  func.func @transform_5(%arg0: i32) -> (i32, i32, i32) {
    %c0_i32 = arith.constant 0 : i32
    %c0_i32_0 = arith.constant 0 : i32
    %c0_i32_1 = arith.constant 0 : i32
    return %arg0, %c0_i32, %c0_i32_0 : i32, i32, i32
  }
}

</mosaic_0001>

<bundles_post_ra>
// kernel: tpu_custom_call.1
= control target key start
LH: loop header
LB: loop body
LE: loop exit
PB: predicated region body
PF: predicated region fallthrough
CT: control target
= control target key end

     0   :  { %10 = vsyncpa [#allocation3], 0  ;;  %s997_s0 = inlined_call_operand.hbm [shape: f32[2,16,256], index: 0, kind: input, shape index: {}]   ;;  %s998_s1 = inlined_call_operand.vmem [shape: f32[16,2], index: 1, kind: input, shape index: {}]   ;;  %s999_s2 = inlined_call_operand.vmem [shape: f32[1,2], index: 2, kind: input, shape index: {}]   ;;  %s1000_s3 = inlined_call_operand.vmem [shape: f32[2,16], index: 3, kind: input, shape index: {}]   ;;  %s1001_s4 = inlined_call_operand.vmem [shape: f32[1,16], index: 4, kind: input, shape index: {}]   ;;  %s1002_s5 = inlined_call_operand.hbm [shape: f32[2,16,256], index: 5, kind: output, shape index: {}]  }
   0x1   :  { %12 = vsyncpa [#allocation3 + $0x1], 0 }
   0x2   :  { %13 = vsyncpa [#allocation4], 0 }
   0x3   :  { %15 = vsyncpa [#allocation4 + $0x1], 0  ;;  %s804_s18 = smov 0   ;;  %s806_s19 = smov 0  }
   0x4   :  { %s808_s20 = smov 0   ;;  %s810_s21 = smov 0  }
   0x5 LB: > { %s825_s22 = sadd.s32 4294967295, %s764_s21   ;;  %s577_s23 = sadd.s32 4294967294, %s764_s21   ;;  %s764_s21 = sphi %s810_s21, %s1017_s21   ;;  %s760_s20 = sphi %s808_s20, %s1016_s20   ;;  %s756_s19 = sphi %s806_s19, %s1015_s19   ;;  %s752_s18 = sphi %s804_s18, %s1014_s18  }
   0x6   : > { %s829_s24 = sadd.s32 1, %s764_s21   ;;  %s28_s25 = sadd.s32 1, %s760_s20 }
   0x7   : > { %s25_s26 = ssub.s32 %s764_s21, %s829_s24  ;;  %p35_p0 = scmp.ne.s32.totalorder %s760_s20, %s756_s19 }
   0x8   : > { %p26_p1 = scmp.eq.s32.totalorder %s25_s26, 0  ;;  %p36_p2 = scmp.eq.s32.totalorder %s764_s21, 0 }
   0x9   : > { %p41_p3 = scmp.ne.s32.totalorder %s756_s19, %s752_s18  ;;  %p42_p4 = scmp.eq.s32.totalorder %s825_s22, 0 }
   0xa   : > { %s841_s27 = scalar_select %p26_p1, %s760_s20, %s28_s25  }
   0xb   : > { %p843_p5 = por %p36_p2, %p35_p0  ;;  %p847_p6 = por %p42_p4, %p41_p3 }
   0xc   : > { %p149_p7 = scmp.eq.s32.totalorder %s825_s22, 1  ;;  %p155_p8 = scmp.eq.s32.totalorder %s577_s23, 1 }
   0xd   : > { %s1006_s29 = scalar_select %p847_p6, 1, 0 }
   0xe   : > { %p628_p10 = scmp.lt.s32.totalorder %s764_s21, 2  ;;  %p854_p11 = por %p149_p7, %p35_p0 }
   0xf   : > { %p858_p12 = por %p155_p8, %p41_p3  ;;  %s187_s7 = sand.u32 1, %s760_s20  }
  0x10   : > { %s1007_s30 = scalar_select %p854_p11, 1, 0 }
  0x11   : > { %s1008_s6 = scalar_select %p858_p12, 1, 0 }
  0x12   : > { %s597_s8 = sshll.u32 %s764_s21, 9  ;;  %s580_s9 = sshll.u32 %s187_s7, 5 }
  0x13   : > { %s867_s12 = scalar_lea.hbm %s997_s0, %s597_s8  ;;  %s191_s13 = scalar_lea.vmem [#allocation2], %s580_s9 }
  0x14   : > { %s198_s14 = sshll.u32 %s191_s13, 4  ;;  %p871_p13 = pnand %p628_p10, %p843_p5  ;;  %s875_s14 = int_to_ptr.vmem [resolvable:$true] %s198_s14 }
  0x15   : > { %s877_s16 = scalar_lea.sflag [#allocation3], %s187_s7  ;;  %s672_s17 = scalar_lea.hbm %s867_s12, 512 }
  0x16   : > { %p673_p0 = scmp.ne.s32.totalorder %s867_s12, %s672_s17  ;;  %p674_p1 = pneg %p871_p13 }
  0x17   : > { %s677_s26 = scalar_lea.hbm %s997_s0, 1024  ;;  %p678_p4 = scmp.lt.s32.totalorder %s867_s12, %s997_s0 }
  0x18   : > { %p675_p2 = pnand %p674_p1, %p673_p0  ;;  %p679_p5 = scmp.lt.s32.totalorder %s677_s26, %s672_s17 }
  0x1a   : > { %p676_p3 = pneg %p675_p2  ;;  %p680_p7 = por %p679_p5, %p678_p4 }
  0x1c   : > { %p681_p8 = pnand %p680_p7, %p676_p3 }
  0x1e   : > { %684 = shalt.err (!%p681_p8)
}
  0x1f   : > { %s685_s7 = scalar_lea.vmem %s875_s14, 512  ;;  %s766_s9 = smov [#allocation2]  }
  0x20   : > { %p686_p10 = scmp.ne.s32.totalorder %s875_s14, %s685_s7  ;;  %s690_s10 = sshll.u32 %s766_s9, 4  ;;  %s691_s10 = int_to_ptr.vmem [resolvable:$false] %s690_s10 }
  0x21   : > { %s692_s11 = scalar_lea.vmem %s691_s10, 1024  ;;  %p693_p2 = scmp.lt.s32.totalorder %s875_s14, %s691_s10 }
  0x22   : > { %p688_p9 = pnand %p686_p10, %p674_p1  ;;  %p694_p12 = scmp.lt.s32.totalorder %s692_s11, %s685_s7 }
  0x24   : > { %p689_p0 = pneg %p688_p9  ;;  %p695_p11 = por %p694_p12, %p693_p2 }
  0x26   : > { %p696_p6 = pnand %p695_p11, %p689_p0 }
  0x28   : > { %699 = shalt.err (!%p696_p6)
}
  0x29   : > { %s767_s13 = smov 256   ;;  %s768_s17 = smov 16  }
  0x2a   : > { %623 = dma.hbm_to_vmem [thread:$0]  (!%p871_p13), %s867_s12, 512, %s875_s14, %s877_s16, %s767_s13, %s767_s13, %s768_s17  }
  0x2b   : > { %p583_p9 = scmp.ge.s32.totalorder %s764_s21, 1  ;;  %p206_p1 = scmp.lt.s32.totalorder %s764_s21, 3 }
  0x2d   : > { %p207_p3 = pnand %p583_p9, %p206_p1 }
  0x2e   : > { %s901_s23 = sand.u32 (!%p207_p3), 1, %s756_s19   ;;  %p1010_p6 = scmp.ne.s32.totalorder (!%p207_p3), %s1006_s29, 0 }
  0x2f   : > { %210 = sbr.rel (%p207_p3) target bundleno = 766 (0x2fe), region = 40  ;;  %s584_s25 = sshll.u32 (!%p207_p3), %s901_s23, 5 }
  0x30   : > { %s213_s26 = scalar_lea.sflag (!%p207_p3), [#allocation3], %s901_s23  ;;  %s216_s28 = scalar_lea.vmem (!%p207_p3), [#allocation2], %s584_s25 }
  0x34   : > { %743 = dma.done.wait (%p1010_p6), %s213_s26, 512  }
  0x35   : > { %745 = vsyncadd (%p1010_p6), %s213_s26, 4294966784  ;;  %v911_v0 = vld [vmem:[%s216_s28] sm:$0xff]  ;;  %v913_v1 = vld [vmem:[%s216_s28 + $0x8] sm:$0xff]  ;;  %v769_v8 = vmov 0.0   ;;  %vm770_vm0 = vmmov 0   ;;  %v263_v11 = vlaneseq  ;;  %vm274_vm1 = vcmask 130112  }
  0x36   : > { %v915_v2 = vld [vmem:[%s216_s28 + $0x10] sm:$0xff]  ;;  %v253_v3 = vadd.f32 %v913_v1, %v911_v0  ;;  %v247_v4 = vmax.f32 %v911_v0, %v913_v1  ;;  %v921_v5 = vld [vmem:[%s216_s28 + $0x18] sm:$0xff]  ;;  %604 = vmatprep.subr.mxu0 %v769_v8  ;;  %v292_v9 = vld [vmem:[%s998_s1 + $0x8] sm:$0xff]  ;;  %611 = vmatprep.subr.mxu1 %v769_v8  ;;  %vm289_vm2 = vcmask 1040384   ;;  %vm300_vm3 = vcmask 130048   ;;  %s242_s13 = scalar_lea.vmem [#allocation5], %s584_s25 }
  0x37   : > { %v256_v6 = vadd.f32 %v921_v5, %v915_v2  ;;  %v250_v7 = vmax.f32 %v915_v2, %v921_v5  ;;  %v291_v10 = vld [vmem:[%s998_s1] sm:$0xff]  ;;  %605 = vmatpush3.msra.mxu0 %v292_v9  ;;  %608 = vmatprep.mubr.msk.f32.mxu0 %vm770_vm0, %v769_v8  ;;  %v264_v12 = vand.u32 127, %v263_v11  ;;  %v266_v14 = vshrl.u32 %v263_v11, 7  ;;  %s504_s17 = sshll.u32 %s242_s13, 4  ;;  %s598_s26 = sshll.u32 %s825_s22, 9  ;;  %s945_s17 = int_to_ptr.vmem [resolvable:$true] %s504_s17 }
  0x38   : > { %254 = vadd.xlane.f32.xlu0 %v253_v3  ;;  %248 = vmax.xlane.f32.xlu1 %v247_v4  ;;  %v375_v30 = vld [vmem:[%s1000_s3] sm:$0x3]  ;;  %vm387_vm4 = vcmask 1041408   ;;  %vm383_vm5 = vcmask 15360   ;;  %s950_s12 = scalar_lea.hbm %s1002_s5, %s598_s26  ;;  %s491_s22 = scalar_lea.sflag [#allocation4], %s901_s23 }
  0x39   : > { %606 = vmatprep.subr.mxu0 %v769_v8  ;;  %613 = vmatprep.mubr.msk.f32.mxu1 %vm770_vm0, %v769_v8  ;;  %v269_v13 = vadd.s32 4294967288, %v264_v12  ;;  %v267_v18 = vsub.s32 %v264_v12, %v266_v14  ;;  %v586_v31 = vld [vmem:[%s999_s2] ss:$0 sm:$0xff]  ;;  %v473_v45 = vsub.s32 0, %v266_v14  ;;  %s700_s25 = scalar_lea.vmem %s945_s17, 512  ;;  %p1011_p12 = scmp.ne.s32.totalorder %s1007_s30, 0 }
  0x3a   : > { %607 = vmatpush3.msra.mxu0 %v291_v10  ;;  %612 = vmatpush3.msk.msra.mxu1 %vm387_vm4, %v375_v30  ;;  %v588_v36 = vld [vmem:[%s1001_s4] ss:$0 sm:$0xff]  ;;  %p701_p11 = scmp.ne.s32.totalorder %s945_s17, %s700_s25  ;;  %s771_s14 = smov [#allocation5]  }
  0x3b   : > { %v272_v17 = vsub.s32 %v269_v13, %v266_v14  ;;  %s704_s15 = sshll.u32 %s771_s14, 4  ;;  %s705_s15 = int_to_ptr.vmem [resolvable:$false] %s704_s15 }
  0x3c   : > { %257 = vadd.xlane.f32.xlu0 %v256_v6  ;;  %251 = vmax.xlane.f32.xlu1 %v250_v7  ;;  %p702_p13 = pnand %p701_p11, %p1011_p12  ;;  %s706_s16 = scalar_lea.vmem %s705_s15, 1024 }
  0x3d   : > { %p707_p5 = scmp.lt.s32.totalorder %s945_s17, %s705_s15  ;;  %p708_p7 = scmp.lt.s32.totalorder %s706_s16, %s700_s25 }
  0x3e   : > { %p703_p4 = pneg %p702_p13 }
  0x3f   : > { %p709_p8 = por %p708_p7, %p707_p5 }
  0x41   : > { %p710_p10 = pnand %p709_p8, %p703_p4 }
  0xc1   : > { %v255_v15 = vpop.xlane.xlu0 %254  ;;  %v249_v16 = vpop.xlane.xlu1 %248 }
  0xc2   : > { %v259_v19 = vmul.f32 0.00390625, %v255_v15  ;;  %v268_v25 = vrot.slane %v249_v16, %v267_v18 }
  0xc4   : > { %v282_v24 = vrot.slane %v259_v19, %v267_v18 }
  0xc5   : > { %v258_v20 = vpop.xlane.xlu0 %257  ;;  %v252_v21 = vpop.xlane.xlu1 %251 }
  0xc6   : > { %v260_v22 = vmul.f32 0.00390625, %v258_v20  ;;  %v273_v23 = vrot.slane %v252_v21, %v272_v17 }
  0xc8   : > { %v286_v26 = vrot.slane %v260_v22, %v272_v17  ;;  %v275_v27 = vsel %vm274_vm1, %v273_v23, %v268_v25 }
  0xca   : > { %v287_v28 = vsel %vm274_vm1, %v286_v26, %v282_v24 }
  0xcb   : > { %v290_v29 = vsel %vm289_vm2, %v275_v27, %v287_v28 }
  0xcc   : > { %609 = vmatmul.mubr.msk.f32.vlgmr.msra.gmra.mxu0 %vm300_vm3, %v290_v29 }
 0x18c   : > { %v370_v32 = vpop.f32.mrf.mxu0 }
 0x18d   : > { %v371_v33 = vadd.f32 %v586_v31, %v370_v32 }
 0x18e   : > { %v610_v34 = vpop.f32.mrf.mxu0 }
 0x18f   : > { %v374_v35 = vmax.f32 %v371_v33, 0.0 }
 0x191   : > { %614 = vmatmul.mubr.msk.f32.vlgmr.msra.gmra.mxu1 %vm383_vm5, %v374_v35 }
 0x251   : > { %v457_v37 = vpop.f32.mrf.mxu1 }
 0x252   : > { %v458_v38 = vadd.f32 %v588_v36, %v457_v37 }
 0x253   : > { %v615_v39 = vpop.f32.mrf.mxu1 }
 0x254   : > { %v462_v40 = vrot.slane %v458_v38, 1 }
 0x256   : > { %v464_v41 = vadd.f32 %v462_v40, %v458_v38 }
 0x258   : > { %v591_v42 = vmul.f32 -1.442695, %v464_v41 }
 0x25a   : > { %668 = vpow2.f32 %v591_v42 }
 0x267   : > { %v669_v43 = vpop.eup %668 }
 0x268   : > { %v468_v44 = vadd.f32 1.0, %v669_v43 }
 0x26a   : > { %670 = vrcp.f32 %v468_v44 }
 0x277   : > { %v671_v46 = vpop.eup %670 }
 0x278   : > { %v474_v47 = vrot.slane %v671_v46, %v473_v45 }
 0x27a   : > { %480 = vbcast.lane.b32.xlu1 %v474_v47, 264  ;;  %476 = vbcast.lane.b32.xlu0 %v474_v47, 256 }
 0x2ec   : > { %v481_v48 = vpop.permute.xlu1 %480  ;;  %v477_v49 = vpop.permute.xlu0 %476 }
 0x2ed   : > { %v484_v50 = vmul.f32 %v481_v48, %v915_v2  ;;  %v485_v51 = vmul.f32 %v481_v48, %v921_v5  ;;  %v482_v52 = vmul.f32 %v477_v49, %v911_v0  ;;  %v483_v53 = vmul.f32 %v477_v49, %v913_v1 }
 0x2ef   : > { %488 = vst [vmem:[%s242_s13 + $0x10] sm:$0xff] %v484_v50  ;;  %489 = vst [vmem:[%s242_s13 + $0x18] sm:$0xff] %v485_v51 }
 0x2f0   : > { %486 = vst [vmem:[%s242_s13] sm:$0xff] %v482_v52  ;;  %487 = vst [vmem:[%s242_s13 + $0x8] sm:$0xff] %v483_v53 }
 0x2f1   : > { %713 = shalt.err (!%p710_p10)
}
 0x2f2   : > { %s714_s8 = scalar_lea.hbm %s950_s12, 512  ;;  %s718_s10 = scalar_lea.hbm %s1002_s5, 1024 }
 0x2f3   : > { %p715_p0 = scmp.ne.s32.totalorder %s950_s12, %s714_s8  ;;  %p719_p1 = scmp.lt.s32.totalorder %s950_s12, %s1002_s5 }
 0x2f4   : > { %p720_p3 = scmp.lt.s32.totalorder %s718_s10, %s714_s8 }
 0x2f5   : > { %p716_p2 = pnand %p715_p0, %p1011_p12 }
 0x2f6   : > { %p721_p6 = por %p720_p3, %p719_p1 }
 0x2f7   : > { %p717_p9 = pneg %p716_p2 }
 0x2f9   : > { %p722_p11 = pnand %p721_p6, %p717_p9 }
 0x2fb   : > { %725 = shalt.err (!%p722_p11)
}
 0x2fc   : > { %s772_s26 = smov 256   ;;  %s773_s28 = smov 16  }
 0x2fd   : > { %618 = dma.vmem_to_hbm [thread:$0]  (%p1011_p12), %s945_s17, 512, %s950_s12, %s491_s22, %s772_s26, %s772_s26, %s773_s28  }
 0x2fe PF: > { %s519_s29 = sand.u32 1, %s752_s18   ;;  %p1012_p13 = scmp.ne.s32.totalorder %s1008_s6, 0 }
 0x2ff   : > { %p1013_p4 = scmp.ge.s32.totalorder %s764_s21, 2  ;;  %s520_s25 = scalar_lea.sflag [#allocation4], %s519_s29 }
 0x301   : > { %p625_p5 = pnand %p1013_p4, %p1012_p13 }
 0x303   : > { %p626_p7 = pneg %p625_p5 }
 0x305   : > { %747 = dma.done.wait (%p626_p7), %s520_s25, 512  }
 0x306   : > { %749 = vsyncadd (%p626_p7), %s520_s25, 4294966784  ;;  %p18_p8 = scmp.ge.s32.totalorder %s829_s24, 4   ;;  %s1014_s18 = smov %s756_s19 }
 0x307   : > { %s1015_s19 = smov %s760_s20  ;;  %s1016_s20 = smov %s841_s27 }
 0x308   : > { %s1017_s21 = smov %s829_s24  ;;  %20 = sbr.rel (!%p18_p8) target bundleno = 5 (0x5), region = 85 }
 0x30d   :  { %525 = vsyncpa [#allocation3], 1 }
 0x30e   :  { %527 = vsyncpa [#allocation3 + $0x1], 1 }
 0x30f   :  { %528 = vsyncpa [#allocation4], 1 }
 0x310   :  { %530 = vsyncpa [#allocation4 + $0x1], 1 }

</bundles_post_ra>
